<compile_context>
chip_gen: v5e
topology: v5e:2x2
jax: 0.10.0
libtpu: 0.0.40
codegen_flags: <defaults>
</compile_context>

<pallas_src>
import functools

import jax
import jax.numpy as jnp
from jax import lax
from jax.experimental import pallas as pl
from jax.experimental.pallas import tpu as pltpu


def _round_up(n, m):
    return ((n + m - 1) // m) * m


def _round_down(n, m):
    return (n // m) * m


# ---------------------------------------------------------------------------
# Kernel
# ---------------------------------------------------------------------------
def _rmse_kernel(x_ref, y_ref, o_ref, acc_ref, *, d, k, inv_d, total_w):
    """One (row_tile, w_tile) tile of the packed (B//k, k*D) problem.

    Grid = (row_tiles [parallel], d_tiles [arbitrary, reduction]).
      x_ref, y_ref : (row_tile, w_tile) input tiles (original dtype)
      o_ref        : (k, row_tile) per-segment RMSE, lane-dense, written on the
                     last d step only (resident across the d axis)
      acc_ref      : (k, row_tile) f32 partial sum-of-squares accumulator
    """
    j = pl.program_id(1)

    @pl.when(j == 0)
    def _init():
        acc_ref[...] = jnp.zeros_like(acc_ref)

    diff = x_ref[...].astype(jnp.float32) - y_ref[...].astype(jnp.float32)
    sq = diff * diff                                    # (R, W), f32
    w = sq.shape[-1]

    # Partial tail d-tile: zero the garbage lanes so NaN/Inf bit patterns in
    # uninitialized VMEM cannot leak into valid rows through the matmul.
    if total_w % w != 0:
        valid = (j * w + lax.broadcasted_iota(jnp.int32, (1, w), 1)) < total_w
        sq = jnp.where(valid, sq, 0.0)

    # 0/1 segment-selection matrix S[s, c] = 1 iff lane c (global packed-row
    # column) belongs to original row segment s.  Columns past the valid packed
    # width match no segment.
    col = j * w + lax.broadcasted_iota(jnp.int32, (k, w), 1)
    seg = lax.broadcasted_iota(jnp.int32, (k, w), 0)
    lo = seg * d
    s_mat = jnp.logical_and(col >= lo, col < lo + d).astype(jnp.float32)

    # Segmented lane reduction on the otherwise-idle MXU:
    #   acc[s, r] += sum_c S[s, c] * sq[r, c]
    # (k, W) . (R, W)^T -> (k, R): result is lane-dense for the output store.
    acc_ref[...] += lax.dot_general(
        s_mat, sq, (((1,), (1,)), ((), ())),
        preferred_element_type=jnp.float32)

    @pl.when(j == pl.num_programs(1) - 1)
    def _finalize():
        o_ref[...] = jnp.sqrt(acc_ref[...] * inv_d).astype(o_ref.dtype)


# ---------------------------------------------------------------------------
# Tiling plan (generation aware)
# ---------------------------------------------------------------------------
def _vmem_capacity_bytes():
    try:
        info = pltpu.get_tpu_info()
        cap = getattr(info, "vmem_capacity_bytes", None)
        if cap:
            return int(cap)
    except Exception:
        pass
    return 64 * 1024 * 1024  # conservative default (v7x-sized VMEM)


def _plan(b, d, itemsize):
    """Choose (k, row_tile, w_tile, vmem_limit) for the packed (b//k, k*d) view."""
    vmem_cap = _vmem_capacity_bytes()
    # ~8 MiB per-input tile on 128 MiB parts (v5e/v6e), ~4 MiB on 64 MiB parts
    # (v7x): 2 inputs x 2 pipeline buffers stay well inside the scoped budget
    # while amortizing the ~0.35 us per-grid-step overhead.
    tile_target = 8 * 2**20 if vmem_cap >= 100 * 2**20 else 4 * 2**20

    # Sublane granularity of the input dtype: 8 rows (32-bit), 16 (bf16),
    # 32 (int8 / fp8).
    gran = 8 * max(1, 4 // max(1, itemsize))

    # Lane packing: k original rows of length d per 128-lane row when d << 128.
    k = 1
    if 0 < d < 128:
        k_max = min(128 // d, b) if b > 0 else 1
        for cand in range(k_max, 0, -1):
            if b % cand == 0:
                k = cand
                break
    b_rows = max(1, b // max(1, k))
    width = k * d

    # Lane (width) tile: full width unless a gran-row slab would blow the target.
    w_cap = max(128, _round_down(tile_target // (gran * itemsize), 128))
    w_tile = width if width <= w_cap else w_cap

    # Row tile from the byte budget, rounded to the dtype granule.
    padded_w = _round_up(max(w_tile, 1), 128)
    row_tile = max(gran, _round_down(tile_target // (padded_w * itemsize), gran))
    if b_rows <= gran:
        row_tile = b_rows                      # full-dim block: always legal
    else:
        # Keep >= 2 (preferably 4) row tiles so the "parallel" axis can be
        # sharded across both v7x TensorCores.
        want_tiles = 4 if b_rows >= 4 * gran else 2
        cap = _round_up(pl.cdiv(b_rows, want_tiles), gran)
        row_tile = min(row_tile, max(gran, cap))
        row_tile = min(row_tile, _round_up(b_rows, gran))

    # Scoped-VMEM limit from the real footprint (2 inputs x 2 buffers + resident
    # output + accumulator) plus headroom, clamped below physical capacity.
    in_tile_bytes = _round_up(row_tile, gran) * padded_w * itemsize
    out_tile_bytes = _round_up(k, 8) * _round_up(max(row_tile, 1), 128) * 4
    vmem_limit = 4 * in_tile_bytes + 3 * out_tile_bytes + (4 << 20)
    vmem_limit = int(min(max(vmem_limit, 16 << 20), int(0.75 * vmem_cap)))

    return int(k), int(row_tile), int(w_tile), vmem_limit


# ---------------------------------------------------------------------------
# Wrapper
# ---------------------------------------------------------------------------
def rmse(x, y, reduction="mean"):
    assert reduction in ("none", "mean", "sum")
    assert x.shape == y.shape, (x.shape, y.shape)
    assert x.dtype == y.dtype, (x.dtype, y.dtype)
    lead_shape = x.shape[:-1]
    d = x.shape[-1]
    b = 1
    for s in lead_shape:
        b *= s

    itemsize = jnp.dtype(x.dtype).itemsize
    k, row_tile, w_tile, vmem_limit = _plan(b, d, itemsize)
    b_rows = b // k
    width = k * d

    # Contiguous (free) reshapes: no HBM re-stream, no host-side padding.
    x2 = x.reshape(b_rows, width)
    y2 = y.reshape(b_rows, width)

    n_row_tiles = pl.cdiv(b_rows, row_tile)
    n_d_tiles = pl.cdiv(width, w_tile)

    out_dtype = x.dtype if reduction == "none" else jnp.float32

    cost = pl.CostEstimate(
        flops=int(5 * b * d),          # sub + square + segmented-sum matmul
        transcendentals=int(b),        # sqrt per row
        bytes_accessed=int(2 * b * d * itemsize + b * jnp.dtype(out_dtype).itemsize),
    )

    kernel = functools.partial(
        _rmse_kernel, d=d, k=k, inv_d=1.0 / float(d), total_w=width)

    out = pl.pallas_call(
        kernel,
        out_shape=jax.ShapeDtypeStruct((n_row_tiles, k, row_tile), out_dtype),
        grid_spec=pltpu.PrefetchScalarGridSpec(
            num_scalar_prefetch=0,
            grid=(n_row_tiles, n_d_tiles),
            in_specs=[
                pl.BlockSpec((row_tile, w_tile), lambda i, j: (i, j)),
                pl.BlockSpec((row_tile, w_tile), lambda i, j: (i, j)),
            ],
            # Lane-dense (k, row_tile) output block, resident across the
            # reduction (d) axis, written only on its last step.
            out_specs=pl.BlockSpec((None, k, row_tile), lambda i, j: (i, 0, 0)),
            scratch_shapes=[pltpu.VMEM((k, row_tile), jnp.float32)],
        ),
        compiler_params=pltpu.CompilerParams(
            dimension_semantics=("parallel", "arbitrary"),
            vmem_limit_bytes=vmem_limit,
        ),
        cost_estimate=cost,
    )(x2, y2)

    # out[t, s, r] holds the RMSE of original row (t*row_tile + r)*k + s.
    # Rows past b (partial tail row tile) are garbage and sliced off HERE, so
    # they never reach the reduction below.
    rows = jnp.transpose(out, (0, 2, 1)).reshape(-1)[:b]

    if reduction == "none":
        return rows.reshape(lead_shape)

    total = jnp.sum(rows.astype(jnp.float32))   # f32 accumulation, valid rows only
    if reduction == "mean":
        total = total / float(b)
    # Match the torch module, which stays in the input dtype throughout.
    return total.astype(x.dtype)


class RootMeanSquareError:
    """Thin module-like wrapper mirroring the PyTorch interface."""

    def __init__(self, reduction="mean"):
        assert reduction in ("none", "mean", "sum")
        self.reduction = reduction

    def __call__(self, x, y):
        return rmse(x, y, reduction=self.reduction)


# ---------------------------------------------------------------------------
# Reference (pure JAX) for validation
# ---------------------------------------------------------------------------
def rmse_ref(x, y, reduction="mean"):
    d = x.shape[-1]
    xf = x.astype(jnp.float32)
    yf = y.astype(jnp.float32)
    err = jnp.linalg.norm(xf - yf, ord=2, axis=-1) / jnp.sqrt(float(d))
    if reduction == "sum":
        err = err.sum()
    elif reduction == "mean":
        err = err.mean()
    return err.astype(x.dtype)


if __name__ == "__main__":
    key = jax.random.PRNGKey(0)
    kx, ky = jax.random.split(key)

    ok = True
    cases = [
        ((2, 4, 16), jnp.float32),    # lane-packed path (k=8), tiny B
        ((2, 5, 16), jnp.float32),    # packing with k=5, odd packed width, B=10
        ((8, 8, 32), jnp.bfloat16),   # bf16 sublane granularity, k=4
    ]
    for shape, dtype in cases:
        x = jax.random.normal(kx, shape, dtype=jnp.float32).astype(dtype)
        y = jax.random.normal(ky, shape, dtype=jnp.float32).astype(dtype)
        tol = 2e-3 if dtype == jnp.float32 else 3e-2
        for reduction in ("mean", "sum", "none"):
            out = jax.block_until_ready(rmse(x, y, reduction=reduction))
            ref = rmse_ref(x, y, reduction=reduction)
            if not jnp.allclose(jnp.asarray(out).astype(jnp.float32),
                                jnp.asarray(ref).astype(jnp.float32),
                                rtol=tol, atol=tol):
                ok = False
                print(f"MISMATCH shape={shape} dtype={dtype} "
                      f"reduction={reduction}: {out} vs {ref}")

    if ok:
        print("KERNEL_OK")
</pallas_src>

<mosaic_0001>
module attributes {stable_mosaic.version = 11 : i64} {
  func.func @_rmse_kernel(%arg0: i32, %arg1: i32, %arg2: memref<1x128xf32, #tpu.memory_space<vmem>>, %arg3: memref<1x128xf32, #tpu.memory_space<vmem>>, %arg4: memref<1x8x1xf32, #tpu.memory_space<vmem>>, %arg5: memref<8x1xf32, #tpu.memory_space<vmem>>) attributes {dimension_semantics = [#tpu.dimension_semantics<parallel>, #tpu.dimension_semantics<arbitrary>], iteration_bounds = array<i64: 1, 1>, scalar_prefetch = 0 : i64, scratch_operands = 1 : i64, tpu.core_type = #tpu.core_type<tc>, window_params = [{transform_indices = @transform_0, window_bounds = array<i64: 1, 128>}, {transform_indices = @transform_1, window_bounds = array<i64: 1, 128>}, {transform_indices = @transform_2, window_bounds = array<i64: 1, 8, 1>}]} {
    %c0_i32 = arith.constant 0 : i32
    %0 = arith.cmpi eq, %arg1, %c0_i32 : i32
    %1 = arith.extui %0 : i1 to i32
    %c0_i32_0 = arith.constant 0 : i32
    %2 = arith.cmpi ne, %1, %c0_i32_0 : i32
    scf.if %2 {
      %cst_11 = arith.constant 0.000000e+00 : f32
      %28 = vector.broadcast %cst_11 : f32 to vector<8x1xf32>
      %c0_12 = arith.constant 0 : index
      %c0_13 = arith.constant 0 : index
      %29 = vector.load %arg5[%c0_12, %c0_13] : memref<8x1xf32, #tpu.memory_space<vmem>>, vector<8x1xf32>
      tpu.vector_store %arg5[%c0_12, %c0_13], %28 {strides = array<i32>} : memref<8x1xf32, #tpu.memory_space<vmem>>, vector<8x1xf32>,
    } else {
    }
    %c0 = arith.constant 0 : index
    %c0_1 = arith.constant 0 : index
    %3 = vector.load %arg2[%c0, %c0_1] : memref<1x128xf32, #tpu.memory_space<vmem>>, vector<1x128xf32>
    %c0_2 = arith.constant 0 : index
    %c0_3 = arith.constant 0 : index
    %4 = vector.load %arg3[%c0_2, %c0_3] : memref<1x128xf32, #tpu.memory_space<vmem>>, vector<1x128xf32>
    %5 = arith.subf %3, %4 : vector<1x128xf32>
    %6 = arith.mulf %5, %5 : vector<1x128xf32>
    %c128_i32 = arith.constant 128 : i32
    %7 = arith.muli %arg1, %c128_i32 : i32
    %8 = tpu.iota {dimensions = array<i32: 1>} : vector<8x128xi32>
    %9 = vector.broadcast %7 : i32 to vector<8x128xi32>
    %10 = arith.addi %9, %8 : vector<8x128xi32>
    %11 = tpu.iota {dimensions = array<i32: 0>} : vector<8x128xi32>
    %c16_i32 = arith.constant 16 : i32
    %12 = vector.broadcast %c16_i32 : i32 to vector<8x128xi32>
    %13 = arith.muli %11, %12 : vector<8x128xi32>
    %14 = arith.cmpi sge, %10, %13 : vector<8x128xi32>
    %c16_i32_4 = arith.constant 16 : i32
    %15 = vector.broadcast %c16_i32_4 : i32 to vector<8x128xi32>
    %16 = arith.addi %13, %15 : vector<8x128xi32>
    %17 = arith.cmpi slt, %10, %16 : vector<8x128xi32>
    %18 = arith.andi %14, %17 : vector<8x128xi1>
    %19 = arith.extui %18 : vector<8x128xi1> to vector<8x128xi32>
    %20 = arith.sitofp %19 : vector<8x128xi32> to vector<8x128xf32>
    %c0_5 = arith.constant 0 : index
    %c0_6 = arith.constant 0 : index
    %21 = vector.load %arg5[%c0_5, %c0_6] : memref<8x1xf32, #tpu.memory_space<vmem>>, vector<8x1xf32>
    %cst = arith.constant dense<0.000000e+00> : vector<8x1xf32>
    %22 = tpu.matmul %20, %6, %cst {dimension_numbers = #tpu.dot_dimension_numbers<[1], [1], [0], [0], [0, 0, 1, 0], [], []>} : vector<8x128xf32>, vector<1x128xf32>, vector<8x1xf32> -> vector<8x1xf32>
    %23 = arith.addf %21, %22 : vector<8x1xf32>
    %c0_7 = arith.constant 0 : index
    %c0_8 = arith.constant 0 : index
    %24 = vector.load %arg5[%c0_7, %c0_8] : memref<8x1xf32, #tpu.memory_space<vmem>>, vector<8x1xf32>
    tpu.vector_store %arg5[%c0_7, %c0_8], %23 {strides = array<i32>} : memref<8x1xf32, #tpu.memory_space<vmem>>, vector<8x1xf32>,
    %c0_i32_9 = arith.constant 0 : i32
    %25 = arith.cmpi eq, %arg1, %c0_i32_9 : i32
    %26 = arith.extui %25 : i1 to i32
    %c0_i32_10 = arith.constant 0 : i32
    %27 = arith.cmpi ne, %26, %c0_i32_10 : i32
    scf.if %27 {
      %c0_11 = arith.constant 0 : index
      %c0_12 = arith.constant 0 : index
      %28 = vector.load %arg5[%c0_11, %c0_12] : memref<8x1xf32, #tpu.memory_space<vmem>>, vector<8x1xf32>
      %cst_13 = arith.constant 6.250000e-02 : f32
      %29 = vector.broadcast %cst_13 : f32 to vector<8x1xf32>
      %30 = arith.mulf %28, %29 : vector<8x1xf32>
      %31 = math.sqrt %30 : vector<8x1xf32>
      %c0_14 = arith.constant 0 : index
      %c0_15 = arith.constant 0 : index
      %c0_16 = arith.constant 0 : index
      %32 = vector.load %arg4[%c0_14, %c0_15, %c0_16] : memref<1x8x1xf32, #tpu.memory_space<vmem>>, vector<1x8x1xf32>
      %33 = vector.shape_cast %32 : vector<1x8x1xf32> to vector<8x1xf32>
      %34 = vector.shape_cast %31 : vector<8x1xf32> to vector<1x8x1xf32>
      tpu.vector_store %arg4[%c0_14, %c0_15, %c0_16], %34 {strides = array<i32>} : memref<1x8x1xf32, #tpu.memory_space<vmem>>, vector<1x8x1xf32>,
    } else {
    }
    return
  }
  func.func @transform_0(%arg0: i32, %arg1: i32) -> (i32, i32) {
    %c0_i32 = arith.constant 0 : i32
    return %arg0, %arg1 : i32, i32
  }
  func.func @transform_1(%arg0: i32, %arg1: i32) -> (i32, i32) {
    %c0_i32 = arith.constant 0 : i32
    return %arg0, %arg1 : i32, i32
  }
  func.func @transform_2(%arg0: i32, %arg1: i32) -> (i32, i32, i32) {
    %c0_i32 = arith.constant 0 : i32
    %c0_i32_0 = arith.constant 0 : i32
    %c0_i32_1 = arith.constant 0 : i32
    return %arg0, %c0_i32, %c0_i32_0 : i32, i32, i32
  }
}

</mosaic_0001>

<bundles_post_ra>
// kernel: tpu_custom_call.1
= control target key start
LH: loop header
LB: loop body
LE: loop exit
PB: predicated region body
PF: predicated region fallthrough
CT: control target
= control target key end

     0   :  { %7 = vsyncpa [#allocation4], 0  ;;  %s185_s0 = inlined_call_operand.hbm [shape: f32[1,128], index: 0, kind: input, shape index: {}]   ;;  %s186_s1 = inlined_call_operand.hbm [shape: f32[1,128], index: 1, kind: input, shape index: {}]   ;;  %s187_s2 = inlined_call_operand.vmem [shape: f32[1,8,1], index: 2, kind: output, shape index: {}]  }
   0x1   :  { %s14_s11 = sshll.u32 %s185_s0, 4  ;;  %s15_s11 = int_to_ptr.hbm [resolvable:$true] %s14_s11 }
   0x2   :  { %8 = vsyncpa [#allocation6], 0  ;;  %s155_s12 = smov [#allocation3]   ;;  %s25_s16 = sshll.u32 %s186_s1, 4  ;;  %s26_s16 = int_to_ptr.hbm [resolvable:$true] %s25_s16 }
   0x3   :  { %s16_s13 = sshll.u32 %s155_s12, 4  ;;  %s156_s17 = smov [#allocation5]   ;;  %s17_s13 = int_to_ptr.vmem [resolvable:$true] %s16_s13 }
   0x4   :  { %19 = dma.hbm_to_vmem [thread:$0]  %s15_s11, 16, %s17_s13, [#allocation4]  }
   0x5   :  { %s27_s18 = sshll.u32 %s156_s17, 4  ;;  %s28_s18 = int_to_ptr.vmem [resolvable:$true] %s27_s18 }
   0x6   :  { %30 = dma.hbm_to_vmem [thread:$0]  %s26_s16, 16, %s28_s18, [#allocation6]  }
   0x7   :  { %151 = dma.done.wait [#allocation4], 16  }
   0x8   :  { %152 = vsyncadd [#allocation4], 4294967280 }
   0x9   :  { %153 = dma.done.wait [#allocation6], 16  }
   0xa   :  { %154 = vsyncadd [#allocation6], 4294967280  ;;  %vm43_vm0 = vcmask 7168   ;;  %v50_v0 = vlaneseq  ;;  %v157_v1 = vmov 0.0   ;;  %v45_v6 = vld [vmem:[#allocation3] sm:$0x1] }
   0xb   :  { %44 = vst.msk [vmem:[#allocation2] sm:$0xff] %vm43_vm0, %v157_v1  ;;  %v46_v7 = vld [vmem:[#allocation5] sm:$0x1] }
   0xc   :  { %v51_v2 = vand.u32 127, %v50_v0  ;;  %v55_v3 = vshrl.u32 %v50_v0, 7  ;;  %v47_v8 = vsub.f32 %v45_v6, %v46_v7 }
   0xe   :  { %v56_v4 = vmul.u32 16, %v55_v3  ;;  %v48_v9 = vmul.f32 %v47_v8, %v47_v8 }
  0x10   :  { %vm57_vm1 = vcmp.ge.s32.totalorder %v51_v2, %v56_v4  ;;  %v58_v5 = vadd.s32 16, %v56_v4  ;;  %v65_v11 = vperm.slane %v48_v9, 0 }
  0x12   :  { %vm59_vm2 = vcmp.lt.s32.totalorder %v51_v2, %v58_v5  ;;  %v63_v13 = vld [vmem:[#allocation2] sm:$0xff] }
  0x13   :  { %vm60_vm3 = vmand %vm57_vm1, %vm59_vm2 }
  0x14   :  { %v97_v10 = vsel %vm60_vm3, 1.0, %v157_v1 }
  0x15   :  { %v67_v12 = vmul.f32 %v97_v10, %v65_v11 }
  0x17   :  { %68 = vadd.xlane.f32.xlu0 %v67_v12 }
  0x8a   :  { %v69_v14 = vpop.xlane.xlu0 %68 }
  0x8b   :  { %v70_v15 = vadd.f32 %v69_v14, %v63_v13 }
  0x8d   :  { %72 = vst.msk [vmem:[#allocation2] sm:$0xff] %vm43_vm0, %v70_v15 }
  0x94   :  { %v76_v16 = vld [vmem:[#allocation2] sm:$0xff] }
  0x95   :  { %v77_v17 = vmul.f32 0.0625, %v76_v16 }
  0x97   :  { %101 = vrsqrt.f32 %v77_v17  ;;  %vm85_vm4 = vcmp.eq.f32.partialorder %v77_v17, inf  ;;  %v88_v25 = vand.u32 2147483648, %v77_v17  ;;  %vm87_vm5 = vcmp.eq.f32.partialorder %v77_v17, 0.0 }
  0x9d   :  { %v102_v18 = vpop.eup %101 }
  0x9e   :  { %v79_v19 = vmul.f32 %v102_v18, %v77_v17 }
  0xa0   :  { %v80_v20 = vmul.f32 %v102_v18, %v79_v19 }
  0xa2   :  { %v81_v21 = vmul.f32 0.5, %v80_v20 }
  0xa4   :  { %v82_v22 = vsub.f32 1.5, %v81_v21 }
  0xa6   :  { %v83_v23 = vmul.f32 %v102_v18, %v82_v22 }
  0xa8   :  { %v84_v24 = vmul.f32 %v83_v23, %v77_v17 }
  0xaa   :  { %v86_v26 = vsel %vm85_vm4, %v77_v17, %v84_v24 }
  0xab   :  { %v89_v27 = vsel %vm87_vm5, %v88_v25, %v86_v26 }
  0xac   :  { %90 = vst.msk [vmem:[%s187_s2] sm:$0xff] %vm43_vm0, %v89_v27 }
  0xad   :  { %95 = vsyncpa [#allocation4], 1 }
  0xae   :  { %96 = vsyncpa [#allocation6], 1 }

</bundles_post_ra>
